<compile_context>
chip_gen: v7x
topology: tpu7x:2x2x1
jax: 0.10.0
libtpu: 0.0.40
codegen_flags: <defaults>
</compile_context>

<pallas_src>
import math

import numpy as np
import jax
import jax.numpy as jnp
from jax import lax
from jax.experimental import pallas as pl
from jax.experimental.pallas import tpu as pltpu


def concat_conv_kernel(x_ref, t_ref, b_ref, o_ref):
    """Fused cat(conv3x3(x), conv3x3(x)) for a block of B images.

    x_ref : (B, H, W*Cin)       f32 lane-dense input slab
    t_ref : (3*W*Cin, W*Cout)   bf16 K-folded block-Toeplitz weights
    b_ref : (1, W*Cout)         f32 bias, tiled per output column
    o_ref : (B, H, W*Cout)      f32 lane-dense output slab
    """
    B, H, WC = x_ref.shape
    BH = B * H

    x = x_ref[...].reshape(BH, WC)        # rows are (image, h) pairs; free reshape

    # kh = 0 / 2 taps: rows shifted by +-1 with zeros at each image's H edges.
    # pltpu.roll runs on the XLU slot; the boundary select is a cheap VPU op.
    row = lax.broadcasted_iota(jnp.int32, (BH, WC), 0)
    x_up = jnp.where(row % H != 0, pltpu.roll(x, shift=1, axis=0), 0.0)
    x_dn = jnp.where(row % H != H - 1, pltpu.roll(x, shift=BH - 1, axis=0), 0.0)

    # Fold the three taps into K and do a single MXU push (bf16 in, f32 acc).
    lhs = jnp.concatenate([x_up, x, x_dn], axis=-1).astype(t_ref.dtype)
    acc = jnp.dot(lhs, t_ref[...], preferred_element_type=jnp.float32)
    acc = acc + b_ref[...]                                  # (1, W*Cout) broadcast

    # W*Cout == 128 here -> every store is a full unmasked vst.
    o_ref[...] = acc.reshape(o_ref.shape).astype(o_ref.dtype)


def _build_toeplitz_kfolded(w_hwio, W):
    """(3, 3, Cin, Cout) conv weights -> (3*W*Cin, W*Cout) K-folded block-Toeplitz.

    T[dh*W*Cin + wi*Cin + ci, wo*Cout + co] = w[dh, wi-wo+1, ci, co] (0 outside
    the 3-tap band), matching lhs rows [x[h-1] | x[h] | x[h+1]], so
    out[h, wo, co] = (lhs @ T)[h, wo*Cout + co] == stride-1 'same' 3x3 conv.
    Built once on the host; tiny (3 * W*Cin * W*Cout elements).
    """
    kh, kw, Cin, Cout = w_hwio.shape
    w_np = np.asarray(w_hwio, dtype=np.float32)
    T = np.zeros((kh, W * Cin, W * Cout), np.float32)
    for dh in range(kh):
        for dw in range(kw):
            for wo in range(W):
                wi = wo + dw - 1
                if 0 <= wi < W:
                    T[dh, wi * Cin:(wi + 1) * Cin,
                      wo * Cout:(wo + 1) * Cout] = w_np[dh, dw]
    return T.reshape(kh * W * Cin, W * Cout)


def fuse_concat_conv_params(w1_pt, b1, w2_pt, b2, W, weight_dtype=jnp.bfloat16):
    """Fuse the two branches: cat of two convs over the same input == one conv
    whose output channels are the concatenation of the two filter banks."""
    assert w1_pt.shape[2:] == (3, 3) and w2_pt.shape[2:] == (3, 3), (
        "fusion assumes 3x3 stride-1 'same' convs in both branches")
    assert w1_pt.shape[1] == w2_pt.shape[1], "branches must share Cin"
    C1, C2 = w1_pt.shape[0], w2_pt.shape[0]
    Cout = C1 + C2
    w_cat = jnp.concatenate(
        [jnp.transpose(w1_pt, (2, 3, 1, 0)), jnp.transpose(w2_pt, (2, 3, 1, 0))],
        axis=-1).astype(jnp.float32)                           # (3, 3, Cin, Cout)
    b_cat = jnp.concatenate([b1, b2]).astype(jnp.float32)      # (Cout,)
    T = jnp.asarray(_build_toeplitz_kfolded(w_cat, W), dtype=weight_dtype)
    b_slab = jnp.tile(b_cat, W).reshape(1, W * Cout)           # (1, W*Cout) f32
    return T, b_slab, Cout


def _largest_divisor_leq(n, k):
    k = max(1, min(n, k))
    while n % k:
        k -= 1
    return k


def concat_forward_slab(x_slab, T, b_slab, *, images_per_step=None,
                        target_rows=256):
    """Fast path: lane-dense (N, H, W*Cin) slab -> (N, H, W*Cout) slab.

    target_rows ~ 256 fills the v6e/v7x MXU M dimension per grid step (128 is
    enough on v5e).  On v7x with large N you may lower target_rows so the grid
    keeps >= 2 parallel steps for both TensorCores; VMEM is never the limit
    here (blocks are KiB-scale).
    """
    N, H, WCin = x_slab.shape
    K3, WCout = T.shape
    # NOTE: W*Cout should be a multiple of 128 to keep full unmasked vst stores
    # (it is 128 here); other widths remain correct but use masked stores.
    if images_per_step is None:
        images_per_step = _largest_divisor_leq(N, max(1, target_rows // max(H, 1)))
    B = images_per_step
    assert N % B == 0, (N, B)
    x_slab = x_slab.astype(jnp.float32)

    flops = 2 * N * H * K3 * WCout
    bytes_accessed = (x_slab.size * x_slab.dtype.itemsize
                      + T.size * T.dtype.itemsize
                      + b_slab.size * b_slab.dtype.itemsize
                      + N * H * WCout * 4)

    return pl.pallas_call(
        concat_conv_kernel,
        out_shape=jax.ShapeDtypeStruct((N, H, WCout), jnp.float32),
        grid=(N // B,),
        in_specs=[
            pl.BlockSpec((B, H, WCin), lambda n: (n, 0, 0)),
            pl.BlockSpec((K3, WCout), lambda n: (0, 0)),
            pl.BlockSpec((1, WCout), lambda n: (0, 0)),
        ],
        out_specs=pl.BlockSpec((B, H, WCout), lambda n: (n, 0, 0)),
        compiler_params=pltpu.CompilerParams(
            dimension_semantics=("parallel",)),
        cost_estimate=pl.CostEstimate(
            flops=flops, transcendentals=0, bytes_accessed=bytes_accessed),
    )(x_slab, T, b_slab)


def concat_forward(x_nchw, w1_pt, b1, w2_pt, b2):
    """PyTorch-parity wrapper: NCHW in -> cat([m1(x), m2(x)], dim=1) in NCHW.

    TODO(synk): the two transposes below exist only for NCHW interface parity;
    in a real pipeline keep activations in the lane-dense slab layout and call
    concat_forward_slab directly (the transposes move more HBM bytes than the
    fused kernel itself).
    """
    N, Cin, H, W = x_nchw.shape
    T, b_slab, Cout = fuse_concat_conv_params(w1_pt, b1, w2_pt, b2, W)
    x_slab = jnp.transpose(x_nchw, (0, 2, 3, 1)).reshape(N, H, W * Cin)
    out_slab = concat_forward_slab(x_slab, T, b_slab)
    out = out_slab.reshape(N, H, W, Cout)
    return jnp.transpose(out, (0, 3, 1, 2))


def concat_reference(x_nchw, w1_pt, b1, w2_pt, b2):
    """Pure-JAX reference mirroring the PyTorch forward: cat([m1(x), m2(x)], 1)."""
    dn = ('NCHW', 'OIHW', 'NCHW')
    x1 = lax.conv_general_dilated(x_nchw, w1_pt, (1, 1), 'SAME',
                                  dimension_numbers=dn) + b1.reshape(1, -1, 1, 1)
    x2 = lax.conv_general_dilated(x_nchw, w2_pt, (1, 1), 'SAME',
                                  dimension_numbers=dn) + b2.reshape(1, -1, 1, 1)
    return jnp.concatenate([x1, x2], axis=1)


if __name__ == "__main__":
    # Small shapes consistent with the module: batch=2, channels=4, spatial 16x16,
    # each branch producing 4 channels -> concatenated output has 8 channels.
    N, Cin, H, W = 2, 4, 16, 16
    C1, C2 = 4, 4

    key = jax.random.PRNGKey(0)
    kx, kw1, kw2, kb1, kb2 = jax.random.split(key, 5)

    x = jax.random.normal(kx, (N, Cin, H, W), dtype=jnp.float32)

    # makeConvLayer-style init: weight ~ N(0, sqrt(2 / (3*3*Cin))).
    std = math.sqrt(2.0 / (3 * 3 * Cin))
    w1 = std * jax.random.normal(kw1, (C1, Cin, 3, 3), dtype=jnp.float32)
    w2 = std * jax.random.normal(kw2, (C2, Cin, 3, 3), dtype=jnp.float32)
    b1 = 0.1 * jax.random.normal(kb1, (C1,), dtype=jnp.float32)
    b2 = 0.1 * jax.random.normal(kb2, (C2,), dtype=jnp.float32)

    out = jax.block_until_ready(concat_forward(x, w1, b1, w2, b2))
    assert out.shape == (N, C1 + C2, H, W), out.shape

    # Strict check: feed the same bf16-quantized operands through the f32
    # lax.conv path -- isolates the Toeplitz / roll / mask indexing logic from
    # bf16 rounding noise.
    q = lambda a: a.astype(jnp.bfloat16).astype(jnp.float32)
    ref_q = jax.block_until_ready(concat_reference(q(x), q(w1), b1, q(w2), b2))
    assert jnp.allclose(out, ref_q, rtol=1e-3, atol=1e-3), (
        float(jnp.max(jnp.abs(out - ref_q))))

    # Loose check against the true-f32 PyTorch-equivalent forward (bf16 MXU
    # operands -> ~1e-2-level differences are expected).
    ref = jax.block_until_ready(concat_reference(x, w1, b1, w2, b2))
    assert jnp.allclose(out, ref, rtol=1e-1, atol=1e-1), (
        float(jnp.max(jnp.abs(out - ref))))

    print("KERNEL_OK")
</pallas_src>

<mosaic_0001>
module attributes {stable_mosaic.version = 11 : i64} {
  func.func @concat_conv_kernel(%arg0: i32, %arg1: memref<2x16x64xf32, #tpu.memory_space<vmem>>, %arg2: memref<192x128xbf16, #tpu.memory_space<vmem>>, %arg3: memref<1x128xf32, #tpu.memory_space<vmem>>, %arg4: memref<2x16x128xf32, #tpu.memory_space<vmem>>) attributes {dimension_semantics = [#tpu.dimension_semantics<parallel>], iteration_bounds = array<i64: 1>, scalar_prefetch = 0 : i64, scratch_operands = 0 : i64, tpu.core_type = #tpu.core_type<tc>, window_params = [{transform_indices = @transform_0, window_bounds = array<i64: 2, 16, 64>}, {pipeline_mode = #tpu.pipeline_mode<synchronous>, transform_indices = @transform_1, window_bounds = array<i64: 192, 128>}, {pipeline_mode = #tpu.pipeline_mode<synchronous>, transform_indices = @transform_2, window_bounds = array<i64: 1, 128>}, {transform_indices = @transform_3, window_bounds = array<i64: 2, 16, 128>}]} {
    %c0 = arith.constant 0 : index
    %c0_0 = arith.constant 0 : index
    %c0_1 = arith.constant 0 : index
    %0 = vector.load %arg1[%c0, %c0_0, %c0_1] : memref<2x16x64xf32, #tpu.memory_space<vmem>>, vector<2x16x64xf32>
    %1 = vector.shape_cast %0 : vector<2x16x64xf32> to vector<32x64xf32>
    %2 = tpu.iota {dimensions = array<i32: 0>} : vector<32x64xi32>
    %c16_i32 = arith.constant 16 : i32
    %c0_i32 = arith.constant 0 : i32
    %3 = arith.cmpi eq, %c16_i32, %c0_i32 : i32
    %c1_i32 = arith.constant 1 : i32
    %4 = arith.select %3, %c1_i32, %c16_i32 : i32
    %5 = vector.broadcast %4 : i32 to vector<32x64xi32>
    %6 = arith.remsi %2, %5 : vector<32x64xi32>
    %c0_i32_2 = arith.constant 0 : i32
    %7 = vector.broadcast %c0_i32_2 : i32 to vector<32x64xi32>
    %8 = arith.cmpi ne, %6, %7 : vector<32x64xi32>
    %c0_i32_3 = arith.constant 0 : i32
    %9 = vector.broadcast %c0_i32_3 : i32 to vector<32x64xi32>
    %10 = arith.cmpi slt, %6, %9 : vector<32x64xi32>
    %c0_i32_4 = arith.constant 0 : i32
    %11 = arith.cmpi slt, %4, %c0_i32_4 : i32
    %12 = vector.broadcast %11 : i1 to vector<32x64xi1>
    %13 = vector.broadcast %12 : vector<32x64xi1> to vector<32x64xi1>
    %14 = arith.xori %10, %13 : vector<32x64xi1>
    %15 = arith.andi %14, %8 : vector<32x64xi1>
    %16 = vector.broadcast %4 : i32 to vector<32x64xi32>
    %17 = arith.addi %6, %16 : vector<32x64xi32>
    %18 = arith.select %15, %17, %6 : vector<32x64xi1>, vector<32x64xi32>
    %c0_i32_5 = arith.constant 0 : i32
    %19 = vector.broadcast %c0_i32_5 : i32 to vector<32x64xi32>
    %20 = arith.cmpi ne, %18, %19 : vector<32x64xi32>
    %c1_i32_6 = arith.constant 1 : i32
    %21 = tpu.dynamic_rotate %1 by %c1_i32_6 dim 0 : vector<32x64xf32>, i32 -> vector<32x64xf32>
    %cst = arith.constant 0.000000e+00 : f32
    %22 = vector.broadcast %cst : f32 to vector<32x64xf32>
    %23 = arith.select %20, %21, %22 : vector<32x64xi1>, vector<32x64xf32>
    %c16_i32_7 = arith.constant 16 : i32
    %c0_i32_8 = arith.constant 0 : i32
    %24 = arith.cmpi eq, %c16_i32_7, %c0_i32_8 : i32
    %c1_i32_9 = arith.constant 1 : i32
    %25 = arith.select %24, %c1_i32_9, %c16_i32_7 : i32
    %26 = vector.broadcast %25 : i32 to vector<32x64xi32>
    %27 = arith.remsi %2, %26 : vector<32x64xi32>
    %c0_i32_10 = arith.constant 0 : i32
    %28 = vector.broadcast %c0_i32_10 : i32 to vector<32x64xi32>
    %29 = arith.cmpi ne, %27, %28 : vector<32x64xi32>
    %c0_i32_11 = arith.constant 0 : i32
    %30 = vector.broadcast %c0_i32_11 : i32 to vector<32x64xi32>
    %31 = arith.cmpi slt, %27, %30 : vector<32x64xi32>
    %c0_i32_12 = arith.constant 0 : i32
    %32 = arith.cmpi slt, %25, %c0_i32_12 : i32
    %33 = vector.broadcast %32 : i1 to vector<32x64xi1>
    %34 = vector.broadcast %33 : vector<32x64xi1> to vector<32x64xi1>
    %35 = arith.xori %31, %34 : vector<32x64xi1>
    %36 = arith.andi %35, %29 : vector<32x64xi1>
    %37 = vector.broadcast %25 : i32 to vector<32x64xi32>
    %38 = arith.addi %27, %37 : vector<32x64xi32>
    %39 = arith.select %36, %38, %27 : vector<32x64xi1>, vector<32x64xi32>
    %c15_i32 = arith.constant 15 : i32
    %40 = vector.broadcast %c15_i32 : i32 to vector<32x64xi32>
    %41 = arith.cmpi ne, %39, %40 : vector<32x64xi32>
    %c31_i32 = arith.constant 31 : i32
    %42 = tpu.dynamic_rotate %1 by %c31_i32 dim 0 : vector<32x64xf32>, i32 -> vector<32x64xf32>
    %cst_13 = arith.constant 0.000000e+00 : f32
    %43 = vector.broadcast %cst_13 : f32 to vector<32x64xf32>
    %44 = arith.select %41, %42, %43 : vector<32x64xi1>, vector<32x64xf32>
    %45 = tpu.concatenate %23, %1, %44 in 1 : vector<32x64xf32>, vector<32x64xf32>, vector<32x64xf32> -> vector<32x192xf32>
    %46 = arith.truncf %45 : vector<32x192xf32> to vector<32x192xbf16>
    %c0_14 = arith.constant 0 : index
    %c0_15 = arith.constant 0 : index
    %47 = vector.load %arg2[%c0_14, %c0_15] : memref<192x128xbf16, #tpu.memory_space<vmem>>, vector<192x128xbf16>
    %cst_16 = arith.constant dense<0.000000e+00> : vector<32x128xf32>
    %48 = tpu.matmul %46, %47, %cst_16 {dimension_numbers = #tpu.dot_dimension_numbers<[1], [0], [0], [1], [0, 0, 1, 1], [], []>} : vector<32x192xbf16>, vector<192x128xbf16>, vector<32x128xf32> -> vector<32x128xf32>
    %c0_17 = arith.constant 0 : index
    %c0_18 = arith.constant 0 : index
    %49 = vector.load %arg3[%c0_17, %c0_18] : memref<1x128xf32, #tpu.memory_space<vmem>>, vector<1x128xf32>
    %50 = vector.broadcast %49 : vector<1x128xf32> to vector<32x128xf32>
    %51 = arith.addf %48, %50 : vector<32x128xf32>
    %52 = vector.shape_cast %51 : vector<32x128xf32> to vector<2x16x128xf32>
    %c0_19 = arith.constant 0 : index
    %c0_20 = arith.constant 0 : index
    %c0_21 = arith.constant 0 : index
    %53 = vector.load %arg4[%c0_19, %c0_20, %c0_21] : memref<2x16x128xf32, #tpu.memory_space<vmem>>, vector<2x16x128xf32>
    tpu.vector_store %arg4[%c0_19, %c0_20, %c0_21], %52 {strides = array<i32>} : memref<2x16x128xf32, #tpu.memory_space<vmem>>, vector<2x16x128xf32>,
    return
  }
  func.func @transform_0(%arg0: i32) -> (i32, i32, i32) {
    %c0_i32 = arith.constant 0 : i32
    %c0_i32_0 = arith.constant 0 : i32
    %c0_i32_1 = arith.constant 0 : i32
    return %arg0, %c0_i32, %c0_i32_0 : i32, i32, i32
  }
  func.func @transform_1(%arg0: i32) -> (i32, i32) {
    %c0_i32 = arith.constant 0 : i32
    %c0_i32_0 = arith.constant 0 : i32
    %c0_i32_1 = arith.constant 0 : i32
    return %c0_i32, %c0_i32_0 : i32, i32
  }
  func.func @transform_2(%arg0: i32) -> (i32, i32) {
    %c0_i32 = arith.constant 0 : i32
    %c0_i32_0 = arith.constant 0 : i32
    %c0_i32_1 = arith.constant 0 : i32
    return %c0_i32, %c0_i32_0 : i32, i32
  }
  func.func @transform_3(%arg0: i32) -> (i32, i32, i32) {
    %c0_i32 = arith.constant 0 : i32
    %c0_i32_0 = arith.constant 0 : i32
    %c0_i32_1 = arith.constant 0 : i32
    return %arg0, %c0_i32, %c0_i32_0 : i32, i32, i32
  }
}

</mosaic_0001>

<bundles_post_ra>
// kernel: tpu_custom_call.1
= control target key start
LH: loop header
LB: loop body
LE: loop exit
PB: predicated region body
PF: predicated region fallthrough
CT: control target
= control target key end

     0   :  { %8 = vsyncpa [#allocation3], 0  ;;  %s624_s0 = inlined_call_operand.hbm [shape: f32[2,16,64], index: 0, kind: input, shape index: {}]   ;;  %s625_s1 = inlined_call_operand.hbm [shape: bf16[192,128], index: 1, kind: input, shape index: {}]   ;;  %s626_s2 = inlined_call_operand.vmem [shape: f32[1,128], index: 2, kind: input, shape index: {}]   ;;  %s627_s3 = inlined_call_operand.hbm [shape: f32[2,16,128], index: 3, kind: output, shape index: {}]  }
   0x1   :  { %9 = vsyncpa [#allocation6], 0 }
   0x2   :  { %10 = vsyncpa [#allocation4], 0  ;;  %s481_s12 = smov [#allocation2]   ;;  %s409_s16 = scalar_lea.hbm %s624_s0, 512 }
   0x3   :  { %s16_s13 = sshll.u32 %s481_s12, 4  ;;  %p410_p0 = scmp.ne.s32.totalorder %s624_s0, %s409_s16  ;;  %s17_s13 = int_to_ptr.vmem [resolvable:$true] %s16_s13 }
   0x4   :  { %p413_p1 = scmp.lt.u32.totalorder %s409_s16, %s624_s0 }
   0x6   :  { %p415_p2 = pnand %p413_p1, %p410_p0 }
   0x8   :  { %418 = shalt.err (!%p415_p2)
}
   0x9   :  { %s419_s21 = scalar_lea.vmem %s17_s13, 512  ;;  %p424_p4 = scmp.lt.s32.totalorder %s17_s13, %s17_s13 }
   0xa   :  { %p420_p3 = scmp.ne.s32.totalorder %s17_s13, %s419_s21  ;;  %p425_p5 = scmp.lt.s32.totalorder %s419_s21, %s419_s21 }
   0xc   :  { %p426_p6 = por %p425_p5, %p424_p4 }
   0xe   :  { %p427_p7 = pnand %p426_p6, %p420_p3 }
  0x10   :  { %430 = shalt.err (!%p427_p7)
}
  0x11   :  { %s482_s22 = smov 128   ;;  %s483_s23 = smov 8  }
  0x12   :  { %22 = dma.hbm_to_vmem [thread:$0]  %s624_s0, 512, %s17_s13, [#allocation3], %s482_s22, %s482_s22, %s483_s23  }
  0x13   :  { %s484_s26 = smov [#allocation5]   ;;  %s431_s30 = scalar_lea.hbm %s625_s1, 1536 }
  0x14   :  { %s28_s27 = sshll.u32 %s484_s26, 4  ;;  %p432_p8 = scmp.ne.s32.totalorder %s625_s1, %s431_s30  ;;  %s29_s27 = int_to_ptr.vmem [resolvable:$true] %s28_s27 }
  0x15   :  { %p435_p9 = scmp.lt.u32.totalorder %s431_s30, %s625_s1 }
  0x17   :  { %p437_p10 = pnand %p435_p9, %p432_p8 }
  0x19   :  { %440 = shalt.err (!%p437_p10)
}
  0x1a   :  { %s441_s8 = scalar_lea.vmem %s29_s27, 1536  ;;  %p446_p12 = scmp.lt.s32.totalorder %s29_s27, %s29_s27 }
  0x1b   :  { %p442_p11 = scmp.ne.s32.totalorder %s29_s27, %s441_s8  ;;  %p447_p13 = scmp.lt.s32.totalorder %s441_s8, %s441_s8 }
  0x1d   :  { %p448_p0 = por %p447_p13, %p446_p12 }
  0x1f   :  { %p449_p1 = pnand %p448_p0, %p442_p11 }
  0x21   :  { %452 = shalt.err (!%p449_p1)
}
  0x22   :  { %s485_s0 = smov 64   ;;  %s486_s9 = smov 4  }
  0x23   :  { %34 = dma.hbm_to_vmem [thread:$0]  %s625_s1, 1536, %s29_s27, [#allocation6], %s485_s0, %s485_s0, %s486_s9  }
  0x24   :  { %475 = dma.done.wait [#allocation3], 512  }
  0x25   :  { %476 = vsyncadd [#allocation3], 4294966784 }
  0x26   :  { %477 = dma.done.wait [#allocation6], 1536  }
  0x27   :  { %478 = vsyncadd [#allocation6], 4294965760  ;;  %v48_v0 = vlaneseq  ;;  %v487_v1 = vmov 0   ;;  %v44_v8 = vld [vmem:[#allocation2] sm:$0xff]  ;;  %v45_v9 = vld [vmem:[#allocation2 + $0x8] sm:$0xff]  ;;  %vm151_vm5 = vcmask 523264  }
  0x28   :  { %269 = vmatprep.subr.bf16.mxu0 %v487_v1  ;;  %355 = vmatprep.subr.bf16.mxu1 %v487_v1  ;;  %v46_v10 = vld [vmem:[#allocation2 + $0x10] sm:$0xff]  ;;  %v106_v14 = vrot.slane %v45_v9, 7  ;;  %v123_v15 = vrot.slane %v45_v9, 1  ;;  %v387_v16 = vpack.i.bf16 %v45_v9, %v44_v8  ;;  %v105_v17 = vrot.slane %v44_v8, 7  ;;  %v47_v18 = vld [vmem:[#allocation2 + $0x18] sm:$0xff]  ;;  %v397_v22 = vld [vmem:[#allocation5] sm:$0xff]  }
  0x29   :  { %v49_v2 = vshrl.u32 %v48_v0, 7  ;;  %v122_v19 = vrot.slane %v44_v8, 1  ;;  %v108_v20 = vrot.slane %v47_v18, 7  ;;  %v125_v21 = vrot.slane %v47_v18, 1  ;;  %270 = vmatpush1.bf16.msra.mxu0 %v397_v22  ;;  %367 = vmatpush1.bf16.msra.mxu1 %v397_v22  ;;  %v398_v27 = vld [vmem:[#allocation5 + $0x8] sm:$0xff]   ;;  %v399_v38 = vld [vmem:[#allocation5 + $0x10] sm:$0xff]  }
  0x2a   :  { %388 = vrot.lane.b32.xlu0 %v387_v16, %s485_s0  ;;  %v392_v23 = vpack.i.bf16 %v47_v18, %v46_v10  ;;  %v107_v24 = vrot.slane %v46_v10, 7  ;;  %v124_v25 = vrot.slane %v46_v10, 1  ;;  %271 = vmatprep.subr.bf16.mxu0 %v487_v1  ;;  %v400_v43 = vld [vmem:[#allocation5 + $0x18] sm:$0xff]   ;;  %v401_v44 = vld [vmem:[#allocation5 + $0x20] sm:$0xff]   ;;  %v402_v45 = vld [vmem:[#allocation5 + $0x28] sm:$0xff]   ;;  %s488_s13 = smov [#allocation7]  }
  0x2b   :  { %v50_v3 = vadd.s32 8, %v49_v2  ;;  %v57_v4 = vand.u32 15, %v49_v2  ;;  %v52_v5 = vadd.s32 24, %v49_v2  ;;  %v51_v6 = vadd.s32 16, %v49_v2  ;;  %356 = vmatprep.subr.bf16.mxu1 %v487_v1  ;;  %v403_v46 = vld [vmem:[#allocation5 + $0x30] sm:$0xff]   ;;  %v404_v47 = vld [vmem:[#allocation5 + $0x38] sm:$0xff]  }
  0x2c   :  { %vm126_vm0 = vcmp.lt.s32.totalorder %v49_v2, 7  ;;  %vm109_vm1 = vcmp.lt.s32.totalorder %v49_v2, 1  ;;  %v405_v48 = vld [vmem:[#allocation5 + $0x40] sm:$0xff]   ;;  %v406_v49 = vld [vmem:[#allocation5 + $0x48] sm:$0xff]   ;;  %v407_v50 = vld [vmem:[#allocation5 + $0x50] sm:$0xff]   ;;  %s327_s14 = sshll.u32 %s488_s13, 4  ;;  %s328_s14 = int_to_ptr.vmem [resolvable:$true] %s327_s14 }
  0x2d   :  { %v64_v7 = vand.u32 15, %v50_v3  ;;  %vm540_vm2 = vcmp.ne.s32.totalorder %v57_v4, 0  ;;  %v78_v12 = vand.u32 15, %v52_v5  ;;  %v71_v13 = vand.u32 15, %v51_v6  ;;  %272 = vmatpush1.bf16.msra.mxu0 %v398_v27  ;;  %368 = vmatpush1.bf16.msra.mxu1 %v398_v27  ;;  %v408_v51 = vld [vmem:[#allocation5 + $0x58] sm:$0xff]   ;;  %p458_p3 = scmp.lt.s32.totalorder %s328_s14, %s328_s14 }
  0x2e   :  { %v546_v26 = vsel %vm109_vm1, %v105_v17, %v106_v14  ;;  %v129_v28 = vsel %vm126_vm0, %v122_v19, %v123_v15  ;;  %v550_v29 = vsel %vm109_vm1, %v108_v20, %v105_v17  ;;  %v128_v30 = vsel %vm126_vm0, %v123_v15, %v124_v25  ;;  %393 = vrot.lane.b32.xlu0 %v392_v23, %s485_s0  ;;  %v340_v0 = vld [vmem:[%s626_s2] ss:$0 sm:$0xff]  ;;  %s453_s2 = scalar_lea.vmem %s328_s14, 512 }
  0x2f   :  { %vm119_vm3 = vcmp.ne.s32.totalorder %v64_v7, 15  ;;  %v114_v31 = vsel %vm540_vm2, %v550_v29, 0.0  ;;  %v130_v32 = vsel %vm126_vm0, %v125_v21, %v122_v19  ;;  %v560_v33 = vsel %vm109_vm1, %v107_v24, %v108_v20  ;;  %273 = vmatprep.subr.bf16.mxu0 %v487_v1  ;;  %357 = vmatprep.subr.bf16.mxu1 %v487_v1  ;;  %p454_p2 = scmp.ne.s32.totalorder %s328_s14, %s453_s2  ;;  %p459_p4 = scmp.lt.s32.totalorder %s453_s2, %s453_s2 }
  0x30   :  { %v132_v34 = vsel %vm119_vm3, %v128_v30, 0.0  ;;  %v127_v35 = vsel %vm126_vm0, %v124_v25, %v125_v21  ;;  %v564_v36 = vsel %vm109_vm1, %v106_v14, %v107_v24  ;;  %vm121_vm4 = vcmp.ne.s32.totalorder %v78_v12, 15 }
  0x31   :  { %v157_v37 = vpack.c.bf16 %v132_v34, %v129_v28  ;;  %v134_v39 = vsel %vm121_vm4, %v130_v32, 0.0  ;;  %vm569_vm6 = vcmp.ne.s32.totalorder %v71_v13, 0  ;;  %274 = vmatpush1.bf16.msra.mxu0 %v399_v38  ;;  %369 = vmatpush1.bf16.msra.mxu1 %v399_v38  ;;  %p460_p5 = por %p459_p4, %p458_p3 }
  0x32   :  { %v159_v40 = vpack.c.bf16 %v134_v39, %v127_v35  ;;  %v116_v42 = vsel %vm569_vm6, %v564_v36, 0.0  ;;  %275 = vmatprep.subr.bf16.mxu0 %v487_v1  ;;  %358 = vmatprep.subr.bf16.mxu1 %v487_v1 }
  0x33   :  { %353 = vmatprep.mubr.msk.bf16.mxu0 %vm151_vm5, %v157_v37  ;;  %p461_p6 = pnand %p460_p5, %p454_p2 }
  0x34   :  { %354 = vmatprep.mubr.msk.bf16.mxu1 %vm151_vm5, %v159_v40 }
  0x35   :  { %276 = vmatpush1.bf16.msra.mxu0 %v400_v43  ;;  %370 = vmatpush1.bf16.msra.mxu1 %v400_v43 }
  0x36   :  { %277 = vmatprep.subr.bf16.mxu0 %v487_v1  ;;  %359 = vmatprep.subr.bf16.mxu1 %v487_v1 }
  0x39   :  { %278 = vmatpush1.bf16.msra.mxu0 %v401_v44  ;;  %371 = vmatpush1.bf16.msra.mxu1 %v401_v44 }
  0x3a   :  { %279 = vmatprep.subr.bf16.mxu0 %v487_v1  ;;  %360 = vmatprep.subr.bf16.mxu1 %v487_v1 }
  0x3d   :  { %280 = vmatpush1.bf16.msra.mxu0 %v402_v45  ;;  %372 = vmatpush1.bf16.msra.mxu1 %v402_v45 }
  0x3e   :  { %281 = vmatprep.subr.bf16.mxu0 %v487_v1  ;;  %361 = vmatprep.subr.bf16.mxu1 %v487_v1 }
  0x41   :  { %282 = vmatpush1.bf16.msra.mxu0 %v403_v46  ;;  %373 = vmatpush1.bf16.msra.mxu1 %v403_v46 }
  0x42   :  { %283 = vmatprep.subr.bf16.mxu0 %v487_v1  ;;  %362 = vmatprep.subr.bf16.mxu1 %v487_v1 }
  0x45   :  { %284 = vmatpush1.bf16.msra.mxu0 %v404_v47  ;;  %374 = vmatpush1.bf16.msra.mxu1 %v404_v47 }
  0x46   :  { %285 = vmatprep.subr.bf16.mxu0 %v487_v1  ;;  %363 = vmatprep.subr.bf16.mxu1 %v487_v1 }
  0x49   :  { %286 = vmatpush1.bf16.msra.mxu0 %v405_v48  ;;  %375 = vmatpush1.bf16.msra.mxu1 %v405_v48 }
  0x4a   :  { %287 = vmatprep.subr.bf16.mxu0 %v487_v1  ;;  %364 = vmatprep.subr.bf16.mxu1 %v487_v1 }
  0x4d   :  { %288 = vmatpush1.bf16.msra.mxu0 %v406_v49  ;;  %376 = vmatpush1.bf16.msra.mxu1 %v406_v49 }
  0x4e   :  { %289 = vmatprep.subr.bf16.mxu0 %v487_v1  ;;  %365 = vmatprep.subr.bf16.mxu1 %v487_v1 }
  0x51   :  { %290 = vmatpush1.bf16.msra.mxu0 %v407_v50  ;;  %377 = vmatpush1.bf16.msra.mxu1 %v407_v50 }
  0x52   :  { %291 = vmatprep.subr.bf16.mxu0 %v487_v1  ;;  %366 = vmatprep.subr.bf16.mxu1 %v487_v1 }
  0x55   :  { %292 = vmatpush1.bf16.msra.mxu0 %v408_v51  ;;  %378 = vmatpush1.bf16.msra.mxu1 %v408_v51 }
  0x9c   :  { %v389_v52 = vpop.permute.xlu0 %388 }
  0x9d   :  { %v391_v53 = vunpack.i.h.bf16 %v389_v52  ;;  %v390_v54 = vunpack.i.l.bf16 %v389_v52 }
  0x9f   :  { %v152_v55 = vsel %vm151_vm5, %v114_v31, %v390_v54  ;;  %v153_v56 = vsel %vm151_vm5, %v546_v26, %v391_v53 }
  0xa0   :  { %v394_v57 = vpop.permute.xlu0 %393  ;;  %v156_v58 = vpack.c.bf16 %v153_v56, %v152_v55 }
  0xa1   :  { %v396_v59 = vunpack.i.h.bf16 %v394_v57  ;;  %v395_v60 = vunpack.i.l.bf16 %v394_v57 }
  0xa2   :  { %302 = vmatmul.mubr.bf16.vlgmr.msra.gmra.mrb[0].mxu0 %v156_v58 }
  0xa3   :  { %v154_v61 = vsel %vm151_vm5, %v116_v42, %v395_v60  ;;  %v155_v62 = vsel %vm151_vm5, %v560_v33, %v396_v59 }
  0xa4   :  { %v158_v63 = vpack.c.bf16 %v155_v62, %v154_v61 }
  0xa6   :  { %310 = vmatmul.mubr.bf16.vlgmr.msra.gmra.mrb[0].mxu1 %v158_v63 }
 0x175   :  { %v303_v1 = vpop.f32.mrb[0].mxu0 }
 0x176   :  { %v304_v2 = vadd.f32 %v340_v0, %v303_v1  ;;  %v305_v3 = vpop.f32.mrb[1].mxu0 }
 0x177   :  { %v306_v4 = vpop.f32.mrb[2].mxu0 }
 0x178   :  { %318 = vst [vmem:[#allocation7] sm:$0xff] %v304_v2  ;;  %v307_v5 = vadd.f32 %v340_v0, %v306_v4  ;;  %v308_v6 = vpop.f32.mrb[3].mxu0 }
 0x179   :  { %v311_v7 = vpop.f32.mrb[0].mxu1 }
 0x17a   :  { %319 = vst [vmem:[#allocation7 + $0x8] sm:$0xff] %v307_v5  ;;  %v312_v8 = vadd.f32 %v340_v0, %v311_v7  ;;  %v313_v9 = vpop.f32.mrb[1].mxu1 }
 0x17b   :  { %v314_v10 = vpop.f32.mrb[2].mxu1 }
 0x17c   :  { %320 = vst [vmem:[#allocation7 + $0x10] sm:$0xff] %v312_v8  ;;  %v315_v11 = vadd.f32 %v340_v0, %v314_v10  ;;  %v316_v12 = vpop.f32.mrb[3].mxu1 }
 0x17e   :  { %321 = vst [vmem:[#allocation7 + $0x18] sm:$0xff] %v315_v11 }
 0x17f   :  { %464 = shalt.err (!%p461_p6)
}
 0x180   :  { %s465_s17 = scalar_lea.hbm %s627_s3, 512 }
 0x181   :  { %p466_p7 = scmp.ne.s32.totalorder %s627_s3, %s465_s17  ;;  %p469_p8 = scmp.lt.u32.totalorder %s465_s17, %s627_s3 }
 0x183   :  { %p471_p9 = pnand %p469_p8, %p466_p7 }
 0x185   :  { %474 = shalt.err (!%p471_p9)
}
 0x186   :  { %333 = dma.vmem_to_hbm [thread:$0]  %s328_s14, 512, %s627_s3, [#allocation4], %s482_s22, %s482_s22, %s483_s23  }
 0x187   :  { %479 = dma.done.wait [#allocation4], 512  }
 0x188   :  { %480 = vsyncadd [#allocation4], 4294966784 }
 0x189   :  { %337 = vsyncpa [#allocation3], 1 }
 0x18a   :  { %338 = vsyncpa [#allocation6], 1 }
 0x18b   :  { %339 = vsyncpa [#allocation4], 1 }

</bundles_post_ra>
